<compile_context>
chip_gen: v7x
topology: tpu7x:2x2x1
jax: 0.10.0
libtpu: 0.0.40
codegen_flags: <defaults>
</compile_context>

<pallas_src>
import jax
import jax.numpy as jnp
from jax import lax
from jax.experimental import pallas as pl
from jax.experimental.pallas import tpu as pltpu


# ----------------------------- helpers --------------------------------------

def _round_up(x, m):
    return (x + m - 1) // m * m


def _pick_tm(m, tm_max):
    """Largest M-tile <= tm_max that divides M (multiple of 8 unless tm == M)."""
    if m <= tm_max:
        return m
    for tm in range(tm_max, 7, -1):
        if m % tm == 0 and tm % 8 == 0:
            return tm
    return m


def _vmem_limit(*buf_bytes):
    """Explicit scoped-VMEM limit: double-buffered tiles + headroom, clamped."""
    need = 2 * sum(buf_bytes) + (4 << 20)
    return int(min(max(need, 16 << 20), 64 << 20))


# ----------------------------- Pallas kernels -------------------------------

def _matmul_stats_kernel(a_ref, b_ref, y_ref, stats_ref):
    """One M-tile of A @ B (bf16 in, f32 MXU accumulate, bf16 streamed out),
    plus per-column sum / sum-of-squares accumulated into the small resident
    stats block.  Reductions are done at full lane width (Ncol); the fold over
    parity groups happens outside on the tiny (2, Ncol) result."""
    i = pl.program_id(0)

    @pl.when(i == 0)
    def _():
        stats_ref[...] = jnp.zeros_like(stats_ref)

    y = jnp.dot(a_ref[...], b_ref[...], preferred_element_type=jnp.float32)
    y_ref[...] = y.astype(y_ref.dtype)
    s = jnp.sum(y, axis=0, keepdims=True)
    s2 = jnp.sum(y * y, axis=0, keepdims=True)
    stats_ref[...] += jnp.concatenate([s, s2], axis=0)


def _bn_relu_apply_kernel(y_ref, scale_ref, shift_ref, o_ref):
    y = y_ref[...].astype(jnp.float32)
    o_ref[...] = jnp.maximum(y * scale_ref[...] + shift_ref[...],
                             0.0).astype(o_ref.dtype)


def _matmul_tanh_kernel(a_ref, b_ref, o_ref):
    y = jnp.dot(a_ref[...], b_ref[...], preferred_element_type=jnp.float32)
    o_ref[...] = jnp.tanh(y)


# ----------------------------- Pallas wrappers ------------------------------

def pallas_matmul_stats(a, b, *, tm_max=512):
    """(M, K) bf16 @ (K, Ncol) bf16 -> (y bf16 (M, Ncol), stats f32 (2, Ncol)).
    stats[0] = column sums of y, stats[1] = column sums of y^2 (f32)."""
    M, K = a.shape
    Kb, Ncol = b.shape
    assert K == Kb
    assert a.dtype == jnp.bfloat16 and b.dtype == jnp.bfloat16
    tm = _pick_tm(M, tm_max)
    vmem = _vmem_limit(tm * K * 2, K * Ncol * 2, tm * Ncol * 2, 2 * Ncol * 4)
    return pl.pallas_call(
        _matmul_stats_kernel,
        out_shape=(jax.ShapeDtypeStruct((M, Ncol), jnp.bfloat16),
                   jax.ShapeDtypeStruct((2, Ncol), jnp.float32)),
        grid_spec=pltpu.PrefetchScalarGridSpec(
            num_scalar_prefetch=0,
            grid=(M // tm,),
            in_specs=[pl.BlockSpec((tm, K), lambda i: (i, 0)),
                      pl.BlockSpec((K, Ncol), lambda i: (0, 0))],
            out_specs=(pl.BlockSpec((tm, Ncol), lambda i: (i, 0)),
                       pl.BlockSpec((2, Ncol), lambda i: (0, 0))),
        ),
        compiler_params=pltpu.CompilerParams(
            # stats accumulate across M tiles -> sequential grid axis.
            dimension_semantics=("arbitrary",),
            vmem_limit_bytes=vmem),
    )(a, b)


def pallas_bn_relu_apply(y, scale_cols, shift_cols, *, tm_max=1024):
    """Elementwise y * scale + shift, ReLU, streamed in bf16."""
    M, Ncol = y.shape
    tm = _pick_tm(M, tm_max)
    vmem = _vmem_limit(tm * Ncol * 2, tm * Ncol * 2, 2 * Ncol * 4)
    return pl.pallas_call(
        _bn_relu_apply_kernel,
        out_shape=jax.ShapeDtypeStruct((M, Ncol), jnp.bfloat16),
        grid_spec=pltpu.PrefetchScalarGridSpec(
            num_scalar_prefetch=0,
            grid=(M // tm,),
            in_specs=[pl.BlockSpec((tm, Ncol), lambda i: (i, 0)),
                      pl.BlockSpec((1, Ncol), lambda i: (0, 0)),
                      pl.BlockSpec((1, Ncol), lambda i: (0, 0))],
            out_specs=pl.BlockSpec((tm, Ncol), lambda i: (i, 0)),
        ),
        compiler_params=pltpu.CompilerParams(
            dimension_semantics=("parallel",),
            vmem_limit_bytes=vmem),
    )(y, scale_cols, shift_cols)


def pallas_matmul_tanh(a, b, *, tm_max=1024):
    """(M, K) bf16 @ (K, Ncol) bf16 -> tanh, f32 output (final layer)."""
    M, K = a.shape
    Kb, Ncol = b.shape
    assert K == Kb
    assert a.dtype == jnp.bfloat16 and b.dtype == jnp.bfloat16
    tm = _pick_tm(M, tm_max)
    vmem = _vmem_limit(tm * K * 2, K * Ncol * 2, tm * Ncol * 4)
    return pl.pallas_call(
        _matmul_tanh_kernel,
        out_shape=jax.ShapeDtypeStruct((M, Ncol), jnp.float32),
        grid_spec=pltpu.PrefetchScalarGridSpec(
            num_scalar_prefetch=0,
            grid=(M // tm,),
            in_specs=[pl.BlockSpec((tm, K), lambda i: (i, 0)),
                      pl.BlockSpec((K, Ncol), lambda i: (0, 0))],
            out_specs=pl.BlockSpec((tm, Ncol), lambda i: (i, 0)),
        ),
        compiler_params=pltpu.CompilerParams(
            dimension_semantics=("parallel",),
            vmem_limit_bytes=vmem),
    )(a, b)


# ------------------------------- JAX glue -----------------------------------
#
# Parity decomposition of ConvTranspose2d(stride=2, pad=1, k=4):
#   out[2m+py, 2n+px] only depends on input pixels in the 3x3 window around
#   (m, n), with a parity-specific 2x2 sub-kernel.  Mapping (parity, window
#   offset) -> kernel tap:
_TAP_OF = {(0, 0): 3, (0, 1): 1, (1, 1): 2, (1, 2): 0}


def _convT_s2_matrices(x_nhwc, w, ncol_pad):
    """x (N,H,W,IC) NHWC bf16, w (IC,OC,4,4) PyTorch ConvTranspose2d weight.
    Returns A (N*H*W, 9*IC) bf16 and B (9*IC, ncol_pad) bf16; output columns
    ordered (py, px, oc), zero-padded up to ncol_pad for lane-dense stores."""
    N, H, W, IC = x_nhwc.shape
    OC = w.shape[1]
    w = w.astype(jnp.bfloat16)
    xp = jnp.pad(x_nhwc, ((0, 0), (1, 1), (1, 1), (0, 0)))
    wins = [xp[:, dy:dy + H, dx:dx + W, :] for dy in range(3) for dx in range(3)]
    A = jnp.stack(wins, axis=3).reshape(N * H * W, 9 * IC)
    B = jnp.zeros((3, 3, IC, 2, 2, OC), jnp.bfloat16)
    for (py, dy), ky in _TAP_OF.items():
        for (px, dx), kx in _TAP_OF.items():
            B = B.at[dy, dx, :, py, px, :].set(w[:, :, ky, kx])
    B = B.reshape(9 * IC, 4 * OC)
    if ncol_pad > 4 * OC:
        B = jnp.pad(B, ((0, 0), (0, ncol_pad - 4 * OC)))
    return A, B


def _parity_to_nhwc(y, N, H, W, OC):
    """(N*H*W, 4*OC) with cols (py, px, oc) -> NHWC (N, 2H, 2W, OC)."""
    y = y.reshape(N, H, W, 2, 2, OC).transpose(0, 1, 3, 2, 4, 5)
    return y.reshape(N, 2 * H, 2 * W, OC)


def _bn_scale_shift(stats, gamma, beta, *, num_groups, oc, count, ncol_pad):
    """Fold (2, Ncol) column stats over the parity groups -> per-channel BN
    scale/shift, tiled back to (1, ncol_pad) (padded columns get 0/0)."""
    s = stats[0, :num_groups * oc].reshape(num_groups, oc).sum(axis=0)
    s2 = stats[1, :num_groups * oc].reshape(num_groups, oc).sum(axis=0)
    mean = s / count
    var = s2 / count - mean * mean          # biased, like PyTorch train-mode BN
    scale = gamma * lax.rsqrt(var + 1e-5)
    shift = beta - mean * scale
    scale_cols = jnp.tile(scale, num_groups)
    shift_cols = jnp.tile(shift, num_groups)
    pad = ncol_pad - num_groups * oc
    if pad:
        scale_cols = jnp.pad(scale_cols, (0, pad))
        shift_cols = jnp.pad(shift_cols, (0, pad))
    return scale_cols.reshape(1, ncol_pad), shift_cols.reshape(1, ncol_pad)


def dcgan_generator64_forward(z, params):
    """z: (N, nz, 1, 1) NCHW.  Returns (N, nc, 64, 64) f32 NCHW like PyTorch."""
    N, nz = z.shape[0], z.shape[1]
    z = z.astype(jnp.bfloat16)

    def bn_layer(A, B, gamma, beta, num_groups, oc, ncol_pad):
        y, stats = pallas_matmul_stats(A, B)
        scale_cols, shift_cols = _bn_scale_shift(
            stats, gamma, beta, num_groups=num_groups, oc=oc,
            count=float(A.shape[0] * num_groups), ncol_pad=ncol_pad)
        return pallas_bn_relu_apply(y, scale_cols, shift_cols)

    # Layer 1: ConvTranspose2d(nz, ngf*8, 4, 1, 0) on a 1x1 input == matmul;
    # output columns ordered (oy, ox, oc) -> reshape straight to NHWC (N,4,4,OC).
    w1 = params["w1"].astype(jnp.bfloat16)
    OC = w1.shape[1]
    ncol = 16 * OC
    ncol_pad = _round_up(ncol, 128)
    A = z.reshape(N, nz)
    B = w1.transpose(0, 2, 3, 1).reshape(nz, ncol)
    if ncol_pad > ncol:
        B = jnp.pad(B, ((0, 0), (0, ncol_pad - ncol)))
    act = bn_layer(A, B, params["g1"], params["b1"], 16, OC, ncol_pad)
    x = act[:, :ncol].reshape(N, 4, 4, OC)

    # Layers 2-4: stride-2 transposed conv (parity form) + BN + ReLU.
    for wn, gn, bn_ in (("w2", "g2", "b2"), ("w3", "g3", "b3"), ("w4", "g4", "b4")):
        w = params[wn]
        OC = w.shape[1]
        H, W = x.shape[1], x.shape[2]
        ncol_pad = _round_up(4 * OC, 128)
        A, B = _convT_s2_matrices(x, w, ncol_pad)
        act = bn_layer(A, B, params[gn], params[bn_], 4, OC, ncol_pad)
        x = _parity_to_nhwc(act[:, :4 * OC], N, H, W, OC)

    # Layer 5: stride-2 transposed conv + Tanh (lane-padded f32 output).
    w = params["w5"]
    OC = w.shape[1]
    H, W = x.shape[1], x.shape[2]
    ncol_pad = _round_up(4 * OC, 128)
    A, B = _convT_s2_matrices(x, w, ncol_pad)
    y = pallas_matmul_tanh(A, B)
    x = _parity_to_nhwc(y[:, :4 * OC], N, H, W, OC)

    return x.transpose(0, 3, 1, 2)   # single NCHW transpose at the very end


def init_params(key, nz, ngf, nc):
    ks = jax.random.split(key, 16)
    n = jax.random.normal

    def convw(k, ic, oc):
        return 0.05 * n(k, (ic, oc, 4, 4), jnp.float32)

    return {
        "w1": convw(ks[0], nz, ngf * 8),
        "w2": convw(ks[1], ngf * 8, ngf * 4),
        "w3": convw(ks[2], ngf * 4, ngf * 2),
        "w4": convw(ks[3], ngf * 2, ngf),
        "w5": convw(ks[4], ngf, nc),
        "g1": 1.0 + 0.02 * n(ks[5], (ngf * 8,), jnp.float32),
        "b1": 0.02 * n(ks[6], (ngf * 8,), jnp.float32),
        "g2": 1.0 + 0.02 * n(ks[7], (ngf * 4,), jnp.float32),
        "b2": 0.02 * n(ks[8], (ngf * 4,), jnp.float32),
        "g3": 1.0 + 0.02 * n(ks[9], (ngf * 2,), jnp.float32),
        "b3": 0.02 * n(ks[10], (ngf * 2,), jnp.float32),
        "g4": 1.0 + 0.02 * n(ks[11], (ngf,), jnp.float32),
        "b4": 0.02 * n(ks[12], (ngf,), jnp.float32),
    }


# Pure-JAX f32 reference (ConvTranspose2d == dilated conv with flipped kernel).
def _ref_forward(z, params):
    def convT(x, w, stride, pad):
        k = w.shape[2]
        w_oihw = w[:, :, ::-1, ::-1].transpose(1, 0, 2, 3)
        return lax.conv_general_dilated(
            x, w_oihw, window_strides=(1, 1),
            padding=[(k - 1 - pad, k - 1 - pad)] * 2,
            lhs_dilation=(stride, stride),
            dimension_numbers=("NCHW", "OIHW", "NCHW"))

    def bn_relu(x, g, b):
        mean = jnp.mean(x, axis=(0, 2, 3), keepdims=True)
        var = jnp.mean((x - mean) ** 2, axis=(0, 2, 3), keepdims=True)
        y = (x - mean) * lax.rsqrt(var + 1e-5)
        y = y * g.reshape(1, -1, 1, 1) + b.reshape(1, -1, 1, 1)
        return jnp.maximum(y, 0.0)

    x = bn_relu(convT(z, params["w1"], 1, 0), params["g1"], params["b1"])
    x = bn_relu(convT(x, params["w2"], 2, 1), params["g2"], params["b2"])
    x = bn_relu(convT(x, params["w3"], 2, 1), params["g3"], params["b3"])
    x = bn_relu(convT(x, params["w4"], 2, 1), params["g4"], params["b4"])
    return jnp.tanh(convT(x, params["w5"], 2, 1))


if __name__ == "__main__":
    # Unit-check the streamed matmul+stats kernel on a multi-tile (grid > 1) M
    # axis, which the tiny end-to-end config below does not exercise.
    ka, kb = jax.random.split(jax.random.PRNGKey(1))
    At = jax.random.normal(ka, (1024, 144), jnp.float32).astype(jnp.bfloat16)
    Bt = jax.random.normal(kb, (144, 128), jnp.float32).astype(jnp.bfloat16)
    yt, st = pallas_matmul_stats(At, Bt, tm_max=256)          # 4 M-tiles
    yt = jax.block_until_ready(yt)
    y_ref = jnp.dot(At.astype(jnp.float32), Bt.astype(jnp.float32))
    s_ref = jnp.stack([y_ref.sum(axis=0), (y_ref * y_ref).sum(axis=0)])
    rel_y = float(jnp.max(jnp.abs(yt.astype(jnp.float32) - y_ref))
                  / (jnp.max(jnp.abs(y_ref)) + 1e-6))
    rel_s = float(jnp.max(jnp.abs(st - s_ref)) / (jnp.max(jnp.abs(s_ref)) + 1e-6))
    assert rel_y < 0.05, f"streamed matmul mismatch: rel err {rel_y}"
    assert rel_s < 0.05, f"streamed stats mismatch: rel err {rel_s}"

    # Small DCGAN config: latent_dim=8, num_filters=8, non-mnist dataset -> nc=3
    batch, nz, ngf, nc = 2, 8, 8, 3
    key = jax.random.PRNGKey(0)
    pkey, zkey = jax.random.split(key)
    params = init_params(pkey, nz, ngf, nc)
    z = jax.random.normal(zkey, (batch, nz, 1, 1), jnp.float32)

    fwd = jax.jit(dcgan_generator64_forward)
    out = jax.block_until_ready(fwd(z, params))

    assert out.shape == (batch, nc, 64, 64), out.shape
    assert out.dtype == jnp.float32
    assert bool(jnp.all(jnp.isfinite(out)))
    assert bool(jnp.all(jnp.abs(out) <= 1.0 + 1e-6))          # tanh range

    # Cross-check against the pure-JAX f32 reference (bf16 data-path tolerance).
    ref = jax.block_until_ready(jax.jit(_ref_forward)(z, params))
    max_err = float(jnp.max(jnp.abs(out - ref)))
    assert max_err < 0.2, f"mismatch vs reference: max abs err = {max_err}"

    print("KERNEL_OK")
</pallas_src>

<mosaic_0001>
module attributes {stable_mosaic.version = 11 : i64} {
  func.func @_matmul_stats_kernel(%arg0: i32, %arg1: memref<256x144xbf16, #tpu.memory_space<vmem>>, %arg2: memref<144x128xbf16, #tpu.memory_space<vmem>>, %arg3: memref<256x128xbf16, #tpu.memory_space<vmem>>, %arg4: memref<2x128xf32, #tpu.memory_space<vmem>>) attributes {dimension_semantics = [#tpu.dimension_semantics<arbitrary>], iteration_bounds = array<i64: 4>, scalar_prefetch = 0 : i64, scratch_operands = 0 : i64, tpu.core_type = #tpu.core_type<tc>, window_params = [{transform_indices = @transform_0, window_bounds = array<i64: 256, 144>}, {pipeline_mode = #tpu.pipeline_mode<synchronous>, transform_indices = @transform_1, window_bounds = array<i64: 144, 128>}, {transform_indices = @transform_2, window_bounds = array<i64: 256, 128>}, {pipeline_mode = #tpu.pipeline_mode<synchronous>, transform_indices = @transform_3, window_bounds = array<i64: 2, 128>}]} {
    %c0_i32 = arith.constant 0 : i32
    %0 = arith.cmpi eq, %arg0, %c0_i32 : i32
    %1 = arith.extui %0 : i1 to i32
    %c0_i32_0 = arith.constant 0 : i32
    %2 = arith.cmpi ne, %1, %c0_i32_0 : i32
    scf.if %2 {
      %cst_12 = arith.constant 0.000000e+00 : f32
      %17 = vector.broadcast %cst_12 : f32 to vector<2x128xf32>
      %c0_13 = arith.constant 0 : index
      %c0_14 = arith.constant 0 : index
      %18 = vector.load %arg4[%c0_13, %c0_14] : memref<2x128xf32, #tpu.memory_space<vmem>>, vector<2x128xf32>
      tpu.vector_store %arg4[%c0_13, %c0_14], %17 {strides = array<i32>} : memref<2x128xf32, #tpu.memory_space<vmem>>, vector<2x128xf32>,
    } else {
    }
    %c0 = arith.constant 0 : index
    %c0_1 = arith.constant 0 : index
    %3 = vector.load %arg1[%c0, %c0_1] : memref<256x144xbf16, #tpu.memory_space<vmem>>, vector<256x144xbf16>
    %c0_2 = arith.constant 0 : index
    %c0_3 = arith.constant 0 : index
    %4 = vector.load %arg2[%c0_2, %c0_3] : memref<144x128xbf16, #tpu.memory_space<vmem>>, vector<144x128xbf16>
    %cst = arith.constant dense<0.000000e+00> : vector<256x128xf32>
    %5 = tpu.matmul %3, %4, %cst {dimension_numbers = #tpu.dot_dimension_numbers<[1], [0], [0], [1], [0, 0, 1, 1], [], []>} : vector<256x144xbf16>, vector<144x128xbf16>, vector<256x128xf32> -> vector<256x128xf32>
    %6 = arith.truncf %5 : vector<256x128xf32> to vector<256x128xbf16>
    %c0_4 = arith.constant 0 : index
    %c0_5 = arith.constant 0 : index
    %7 = vector.load %arg3[%c0_4, %c0_5] : memref<256x128xbf16, #tpu.memory_space<vmem>>, vector<256x128xbf16>
    tpu.vector_store %arg3[%c0_4, %c0_5], %6 {strides = array<i32>} : memref<256x128xbf16, #tpu.memory_space<vmem>>, vector<256x128xbf16>,
    %cst_6 = arith.constant dense<0.000000e+00> : vector<128xf32>
    %8 = vector.multi_reduction <add>, %5, %cst_6 [0] : vector<256x128xf32> to vector<128xf32>
    %9 = vector.shape_cast %8 : vector<128xf32> to vector<1x128xf32>
    %10 = arith.mulf %5, %5 : vector<256x128xf32>
    %cst_7 = arith.constant dense<0.000000e+00> : vector<128xf32>
    %11 = vector.multi_reduction <add>, %10, %cst_7 [0] : vector<256x128xf32> to vector<128xf32>
    %12 = vector.shape_cast %11 : vector<128xf32> to vector<1x128xf32>
    %c0_8 = arith.constant 0 : index
    %c0_9 = arith.constant 0 : index
    %13 = vector.load %arg4[%c0_8, %c0_9] : memref<2x128xf32, #tpu.memory_space<vmem>>, vector<2x128xf32>
    %14 = tpu.concatenate %9, %12 in 0 : vector<1x128xf32>, vector<1x128xf32> -> vector<2x128xf32>
    %15 = arith.addf %13, %14 : vector<2x128xf32>
    %c0_10 = arith.constant 0 : index
    %c0_11 = arith.constant 0 : index
    %16 = vector.load %arg4[%c0_10, %c0_11] : memref<2x128xf32, #tpu.memory_space<vmem>>, vector<2x128xf32>
    tpu.vector_store %arg4[%c0_10, %c0_11], %15 {strides = array<i32>} : memref<2x128xf32, #tpu.memory_space<vmem>>, vector<2x128xf32>,
    return
  }
  func.func @transform_0(%arg0: i32) -> (i32, i32) {
    %c0_i32 = arith.constant 0 : i32
    %c0_i32_0 = arith.constant 0 : i32
    return %arg0, %c0_i32 : i32, i32
  }
  func.func @transform_1(%arg0: i32) -> (i32, i32) {
    %c0_i32 = arith.constant 0 : i32
    %c0_i32_0 = arith.constant 0 : i32
    %c0_i32_1 = arith.constant 0 : i32
    return %c0_i32, %c0_i32_0 : i32, i32
  }
  func.func @transform_2(%arg0: i32) -> (i32, i32) {
    %c0_i32 = arith.constant 0 : i32
    %c0_i32_0 = arith.constant 0 : i32
    return %arg0, %c0_i32 : i32, i32
  }
  func.func @transform_3(%arg0: i32) -> (i32, i32) {
    %c0_i32 = arith.constant 0 : i32
    %c0_i32_0 = arith.constant 0 : i32
    %c0_i32_1 = arith.constant 0 : i32
    return %c0_i32, %c0_i32_0 : i32, i32
  }
}

</mosaic_0001>

<bundles_post_ra>
// kernel: tpu_custom_call.1
= control target key start
LH: loop header
LB: loop body
LE: loop exit
PB: predicated region body
PF: predicated region fallthrough
CT: control target
= control target key end

     0   :  { %9 = vsyncpa [#allocation3], 0  ;;  %s1809_s0 = inlined_call_operand.vmem [shape: bf16[1024,144], index: 0, kind: input, shape index: {}]   ;;  %s1810_s1 = inlined_call_operand.vmem [shape: bf16[144,128], index: 1, kind: input, shape index: {}]   ;;  %s1811_s2 = inlined_call_operand.hbm [shape: bf16[1024,128], index: 2, kind: output, shape index: {0}]   ;;  %s1812_s3 = inlined_call_operand.hbm [shape: f32[2,128], index: 3, kind: output, shape index: {1}]  }
   0x1   :  { %11 = vsyncpa [#allocation3 + $0x1], 0 }
   0x2   :  { %12 = vsyncpa [#allocation5], 0  ;;  %s1486_s12 = smov 0   ;;  %s1488_s13 = smov 0  }
   0x3   :  { %s1490_s14 = smov 0   ;;  %s1492_s15 = smov 0  }
   0x4 LB: > { %s1507_s16 = sadd.s32 4294967295, %s1458_s15   ;;  %s1007_s17 = sadd.s32 4294967294, %s1458_s15   ;;  %s1458_s15 = sphi %s1492_s15, %s1818_s15   ;;  %s1454_s14 = sphi %s1490_s14, %s1817_s14   ;;  %s1450_s13 = sphi %s1488_s13, %s1816_s13   ;;  %s1446_s12 = sphi %s1486_s12, %s1815_s12  }
   0x5   : > { %s1511_s18 = sadd.s32 1, %s1458_s15   ;;  %s72_s19 = sadd.s32 1, %s1454_s14 }
   0x6   : > { %s69_s20 = ssub.s32 %s1458_s15, %s1511_s18  ;;  %p82_p0 = scmp.ne.s32.totalorder %s1454_s14, %s1450_s13 }
   0x7   : > { %p70_p1 = scmp.eq.s32.totalorder %s69_s20, 0  ;;  %p83_p2 = scmp.eq.s32.totalorder %s1507_s16, 3 }
   0x8   : > { %p88_p3 = scmp.ne.s32.totalorder %s1450_s13, %s1446_s12  ;;  %p89_p4 = scmp.eq.s32.totalorder %s1007_s17, 3 }
   0x9   : > { %s1522_s21 = scalar_select %p70_p1, %s1454_s14, %s72_s19  }
   0xa   : > { %p1526_p5 = por %p83_p2, %p82_p0  ;;  %p1530_p6 = por %p89_p4, %p88_p3 }
   0xb   : > { %p1010_p7 = scmp.ge.s32.totalorder %s1458_s15, 1  ;;  %p141_p8 = scmp.lt.s32.totalorder %s1458_s15, 5 }
   0xd   : > { %p142_p9 = pnand %p1010_p7, %p141_p8 }
   0xe   : > { %s161_s24 = sand.u32 (!%p142_p9), 1, %s1450_s13   ;;  %s1012_s25 = sshll.u32 (!%p142_p9), %s1507_s16, 5 }
   0xf   : > { %145 = sbr.rel (%p142_p9) target bundleno = 413 (0x19d), region = 28  ;;  %s1011_s26 = sshll.u32 (!%p142_p9), %s161_s24, 7 }
  0x10   : > { %p167_p10 = scmp.lt.s32.totalorder (!%p142_p9), %s1012_s25, 127  ;;  %s1545_s4 = scalar_lea.vmem (!%p142_p9), [#allocation2], %s1011_s26 }
  0x11   : > { %p1015_p11 = scmp.ne.s32.totalorder (!%p142_p9), %s1507_s16, 0 }
  0x16   : > { %s1820_s25 = smov (!%p167_p10, %s1012_s25), 127  ;;  %178 = sbr.rel (%p1015_p11) target bundleno = 29 (0x1d), region = 32 }
  0x17   : > { %s1112_s27 = sshll.u32 %s1820_s25, 3  ;;  %v1460_v0 = vmov (!%p1015_p11), 0.0  }
  0x18   : > { %s1543_s30 = scalar_lea.vmem %s1809_s0, %s1112_s27  ;;  %179 = vst [vmem:[#allocation4] sm:$0x3] (!%p1015_p11), %v1460_v0 }
  0x1d PF: > { %v1309_v1 = vld [vmem:[%s1810_s1] sm:$0xff]   ;;  %v1461_v2 = vmov 0   ;;  %v1310_v3 = vld [vmem:[%s1810_s1 + $0x8] sm:$0xff]   ;;  %v1311_v4 = vld [vmem:[%s1810_s1 + $0x10] sm:$0xff]   ;;  %vm428_vm0 = vcmask 130048   ;;  %s923_s8 = sshll.u32 %s1545_s4, 4  ;;  %s1690_s8 = int_to_ptr.vmem [resolvable:$true] %s923_s8 }
  0x1e   : > { %477 = vmatprep.subr.bf16.mxu0 %v1461_v2  ;;  %1241 = vmatprep.subr.bf16.mxu1 %v1461_v2  ;;  %v1312_v5 = vld [vmem:[%s1810_s1 + $0x18] sm:$0xff]   ;;  %v1320_v6 = vld [vmem:[%s1543_s30 + $0x4] ss:$8 sps:$4 sm:$0xff]   ;;  %v1315_v10 = vld [vmem:[%s1810_s1 + $0x30] sm:$0xff]   ;;  %s1704_s17 = scalar_lea.sflag [#allocation3], %s161_s24  ;;  %s1366_s19 = scalar_lea.vmem %s1690_s8, 2048 }
  0x1f   : > { %478 = vmatpush1.bf16.msra.mxu0 %v1309_v1  ;;  %1250 = vmatpush1.bf16.msra.mxu1 %v1309_v1  ;;  %v1313_v7 = vld [vmem:[%s1810_s1 + $0x20] sm:$0xff]   ;;  %v1314_v9 = vld [vmem:[%s1810_s1 + $0x28] sm:$0xff]   ;;  %v1316_v11 = vld [vmem:[%s1810_s1 + $0x38] sm:$0xff]   ;;  %p1367_p12 = scmp.ne.s32.totalorder %s1690_s8, %s1366_s19  ;;  %s1462_s20 = smov [#allocation2]  }
  0x20   : > { %479 = vmatprep.subr.bf16.mxu0 %v1461_v2  ;;  %1242 = vmatprep.subr.bf16.mxu1 %v1461_v2  ;;  %v1332_v8 = vld [vmem:[%s1543_s30 + $0x84] ss:$8 sps:$4 sm:$0xff]   ;;  %v1318_v13 = vld [vmem:[%s1543_s30] ss:$8 sps:$4 sm:$0xff]   ;;  %v1321_v15 = vld [vmem:[%s1543_s30 + $0x14] ss:$8 sps:$4 sm:$0xff]  }
  0x21   : > { %1057 = vmatprep.mubr.msk.bf16.mxu0 %vm428_vm0, %v1320_v6  ;;  %1065 = vmatprep.mubr.msk.bf16.mxu1 %vm428_vm0, %v1332_v8  ;;  %v1317_v12 = vld [vmem:[%s1810_s1 + $0x40] sm:$0xff]   ;;  %v1336_v16 = vld [vmem:[%s1543_s30 + $0x94] ss:$8 sps:$4 sm:$0xff]   ;;  %v1323_v17 = vld [vmem:[%s1543_s30 + $0x10] ss:$8 sps:$4 sm:$0xff]   ;;  %p1368_p13 = pnand %p1367_p12, %p1526_p5  ;;  %s1370_s25 = sshll.u32 %s1462_s20, 4  ;;  %s1371_s25 = int_to_ptr.vmem [resolvable:$false] %s1370_s25 }
  0x22   : > { %v1330_v14 = vld [vmem:[%s1543_s30 + $0x80] ss:$8 sps:$4 sm:$0xff]   ;;  %v1338_v18 = vld [vmem:[%s1543_s30 + $0x90] ss:$8 sps:$4 sm:$0xff]   ;;  %v1324_v19 = vld [vmem:[%s1543_s30 + $0x24] ss:$8 sps:$4 sm:$0xff]   ;;  %p1373_p1 = scmp.lt.s32.totalorder %s1690_s8, %s1371_s25 }
  0x23   : > { %480 = vmatpush1.bf16.msra.mxu0 %v1310_v3  ;;  %1251 = vmatpush1.bf16.msra.mxu1 %v1310_v3  ;;  %v1342_v20 = vld [vmem:[%s1543_s30 + $0xa4] ss:$8 sps:$4 sm:$0xff]   ;;  %v1326_v21 = vld [vmem:[%s1543_s30 + $0x20] ss:$8 sps:$4 sm:$0xff]   ;;  %v1327_v23 = vld [vmem:[%s1543_s30 + $0x34] ss:$8 sps:$4 sm:$0xff]   ;;  %p1369_p0 = pneg %p1368_p13 }
  0x24   : > { %481 = vmatprep.subr.bf16.mxu0 %v1461_v2  ;;  %1243 = vmatprep.subr.bf16.mxu1 %v1461_v2  ;;  %v1344_v22 = vld [vmem:[%s1543_s30 + $0xa0] ss:$8 sps:$4 sm:$0xff]   ;;  %v1348_v24 = vld [vmem:[%s1543_s30 + $0xb4] ss:$8 sps:$4 sm:$0xff]   ;;  %v1329_v25 = vld [vmem:[%s1543_s30 + $0x30] ss:$8 sps:$4 sm:$0xff]  }
  0x25   : > { %v1350_v26 = vld [vmem:[%s1543_s30 + $0xb0] ss:$8 sps:$4 sm:$0xff]   ;;  %v1333_v27 = vld [vmem:[%s1543_s30 + $0x44] ss:$8 sps:$4 sm:$0xff]   ;;  %v1335_v29 = vld [vmem:[%s1543_s30 + $0x40] ss:$8 sps:$4 sm:$0xff]  }
  0x26   : > { %v1354_v28 = vld [vmem:[%s1543_s30 + $0xc4] ss:$8 sps:$4 sm:$0xff]   ;;  %v1356_v30 = vld [vmem:[%s1543_s30 + $0xc0] ss:$8 sps:$4 sm:$0xff]   ;;  %v1339_v31 = vld [vmem:[%s1543_s30 + $0x54] ss:$8 sps:$4 sm:$0xff]  }
  0x27   : > { %482 = vmatpush1.bf16.msra.mxu0 %v1311_v4  ;;  %1252 = vmatpush1.bf16.msra.mxu1 %v1311_v4  ;;  %v1357_v32 = vld [vmem:[%s1543_s30 + $0xd4] ss:$8 sps:$4 sm:$0xff]   ;;  %v1341_v33 = vld [vmem:[%s1543_s30 + $0x50] ss:$8 sps:$4 sm:$0xff]   ;;  %v1345_v35 = vld [vmem:[%s1543_s30 + $0x64] ss:$8 sps:$4 sm:$0xff]  }
  0x28   : > { %483 = vmatprep.subr.bf16.mxu0 %v1461_v2  ;;  %1244 = vmatprep.subr.bf16.mxu1 %v1461_v2  ;;  %v1359_v34 = vld [vmem:[%s1543_s30 + $0xd0] ss:$8 sps:$4 sm:$0xff]   ;;  %v1360_v36 = vld [vmem:[%s1543_s30 + $0xe4] ss:$8 sps:$4 sm:$0xff]   ;;  %v1347_v37 = vld [vmem:[%s1543_s30 + $0x60] ss:$8 sps:$4 sm:$0xff]  }
  0x29   : > { %v1362_v38 = vld [vmem:[%s1543_s30 + $0xe0] ss:$8 sps:$4 sm:$0xff]   ;;  %v1351_v39 = vld [vmem:[%s1543_s30 + $0x74] ss:$8 sps:$4 sm:$0xff]   ;;  %v1353_v41 = vld [vmem:[%s1543_s30 + $0x70] ss:$8 sps:$4 sm:$0xff]  }
  0x2a   : > { %v1363_v40 = vld [vmem:[%s1543_s30 + $0xf4] ss:$8 sps:$4 sm:$0xff]   ;;  %v1365_v42 = vld [vmem:[%s1543_s30 + $0xf0] ss:$8 sps:$4 sm:$0xff]   ;;  %s1145_s30 = sshll.u32 %s1507_s16, 11  ;;  %s1372_s26 = scalar_lea.vmem %s1371_s25, 4096 }
  0x2b   : > { %484 = vmatpush1.bf16.msra.mxu0 %v1312_v5  ;;  %1253 = vmatpush1.bf16.msra.mxu1 %v1312_v5  ;;  %s1688_s11 = scalar_lea.hbm %s1811_s2, %s1145_s30  ;;  %p1374_p3 = scmp.lt.s32.totalorder %s1372_s26, %s1366_s19 }
  0x2c   : > { %485 = vmatprep.subr.bf16.mxu0 %v1461_v2  ;;  %1245 = vmatprep.subr.bf16.mxu1 %v1461_v2 }
  0x2d   : > { %p1375_p4 = por %p1374_p3, %p1373_p1 }
  0x2f   : > { %486 = vmatpush1.bf16.msra.mxu0 %v1313_v7  ;;  %1254 = vmatpush1.bf16.msra.mxu1 %v1313_v7  ;;  %p1376_p7 = pnand %p1375_p4, %p1369_p0 }
  0x30   : > { %487 = vmatprep.subr.bf16.mxu0 %v1461_v2  ;;  %1246 = vmatprep.subr.bf16.mxu1 %v1461_v2 }
  0x33   : > { %488 = vmatpush1.bf16.msra.mxu0 %v1314_v9  ;;  %1255 = vmatpush1.bf16.msra.mxu1 %v1314_v9 }
  0x34   : > { %489 = vmatprep.subr.bf16.mxu0 %v1461_v2  ;;  %1247 = vmatprep.subr.bf16.mxu1 %v1461_v2 }
  0x37   : > { %490 = vmatpush1.bf16.msra.mxu0 %v1315_v10  ;;  %1256 = vmatpush1.bf16.msra.mxu1 %v1315_v10 }
  0x38   : > { %491 = vmatprep.subr.bf16.mxu0 %v1461_v2  ;;  %1248 = vmatprep.subr.bf16.mxu1 %v1461_v2 }
  0x3b   : > { %492 = vmatpush1.bf16.msra.mxu0 %v1316_v11  ;;  %1257 = vmatpush1.bf16.msra.mxu1 %v1316_v11 }
  0x3c   : > { %493 = vmatprep.subr.bf16.mxu0 %v1461_v2  ;;  %1249 = vmatprep.subr.bf16.mxu1 %v1461_v2 }
  0x3f   : > { %494 = vmatpush1.bf16.msra.mxu0 %v1317_v12  ;;  %1258 = vmatpush1.bf16.msra.mxu1 %v1317_v12 }
  0x42   : > { %510 = vmatmul.mubr.bf16.vlgmr.msra.gmra.mrb[0].mxu0 %v1318_v13  ;;  %574 = vmatmul.mubr.bf16.vlgmr.msra.gmra.mrb[0].mxu1 %v1330_v14 }
  0x43   : > { %1058 = vmatprep.mubr.msk.bf16.mxu0 %vm428_vm0, %v1321_v15  ;;  %1066 = vmatprep.mubr.msk.bf16.mxu1 %vm428_vm0, %v1336_v16 }
  0x4a   : > { %518 = vmatmul.mubr.bf16.gmra.mrb[4].mxu0 %v1323_v17  ;;  %582 = vmatmul.mubr.bf16.gmra.mrb[4].mxu1 %v1338_v18 }
  0x4b   : > { %1059 = vmatprep.mubr.msk.bf16.mxu0 %vm428_vm0, %v1324_v19  ;;  %1067 = vmatprep.mubr.msk.bf16.mxu1 %vm428_vm0, %v1342_v20 }
  0x52   : > { %526 = vmatmul.mubr.bf16.gmra.mrb[8].mxu0 %v1326_v21  ;;  %590 = vmatmul.mubr.bf16.gmra.mrb[8].mxu1 %v1344_v22 }
  0x53   : > { %1060 = vmatprep.mubr.msk.bf16.mxu0 %vm428_vm0, %v1327_v23  ;;  %1068 = vmatprep.mubr.msk.bf16.mxu1 %vm428_vm0, %v1348_v24 }
  0x5a   : > { %534 = vmatmul.mubr.bf16.gmra.mrb[12].mxu0 %v1329_v25  ;;  %598 = vmatmul.mubr.bf16.gmra.mrb[12].mxu1 %v1350_v26 }
  0x5b   : > { %1061 = vmatprep.mubr.msk.bf16.mxu0 %vm428_vm0, %v1333_v27  ;;  %1069 = vmatprep.mubr.msk.bf16.mxu1 %vm428_vm0, %v1354_v28 }
  0x62   : > { %542 = vmatmul.mubr.bf16.gmra.mrb[16].mxu0 %v1335_v29  ;;  %606 = vmatmul.mubr.bf16.gmra.mrb[16].mxu1 %v1356_v30 }
  0x63   : > { %1062 = vmatprep.mubr.msk.bf16.mxu0 %vm428_vm0, %v1339_v31  ;;  %1070 = vmatprep.mubr.msk.bf16.mxu1 %vm428_vm0, %v1357_v32 }
  0x6a   : > { %550 = vmatmul.mubr.bf16.gmra.mrb[20].mxu0 %v1341_v33  ;;  %614 = vmatmul.mubr.bf16.gmra.mrb[20].mxu1 %v1359_v34 }
  0x6b   : > { %1063 = vmatprep.mubr.msk.bf16.mxu0 %vm428_vm0, %v1345_v35  ;;  %1071 = vmatprep.mubr.msk.bf16.mxu1 %vm428_vm0, %v1360_v36 }
  0x72   : > { %558 = vmatmul.mubr.bf16.gmra.mrb[24].mxu0 %v1347_v37  ;;  %622 = vmatmul.mubr.bf16.gmra.mrb[24].mxu1 %v1362_v38 }
  0x73   : > { %1064 = vmatprep.mubr.msk.bf16.mxu0 %vm428_vm0, %v1351_v39  ;;  %1072 = vmatprep.mubr.msk.bf16.mxu1 %vm428_vm0, %v1363_v40 }
  0x7a   : > { %566 = vmatmul.mubr.bf16.gmra.mrb[28].mxu0 %v1353_v41  ;;  %630 = vmatmul.mubr.bf16.gmra.mrb[28].mxu1 %v1365_v42 }
 0x115   : > { %v511_v43 = vpop.f32.mrb[0].mxu0  ;;  %v1623_v44 = vpop.f32.mrb[0].mxu1 }
 0x116   : > { %v513_v45 = vpop.f32.mrb[1].mxu0  ;;  %v577_v46 = vpop.f32.mrb[1].mxu1  ;;  %v835_v47 = vmul.f32 %v511_v43, %v511_v43 }
 0x117   : > { %v514_v48 = vpop.f32.mrb[2].mxu0  ;;  %v1625_v49 = vpop.f32.mrb[2].mxu1 }
 0x118   : > { %v1149_v50 = vpack.c.bf16 %v514_v48, %v511_v43  ;;  %v798_v51 = vadd.f32 %v514_v48, %v511_v43  ;;  %v836_v52 = vmul.f32 %v514_v48, %v514_v48  ;;  %v516_v53 = vpop.f32.mrb[3].mxu0  ;;  %v1189_v54 = vpack.c.bf16 %v1625_v49, %v1623_v44  ;;  %v580_v55 = vpop.f32.mrb[3].mxu1 }
 0x11a   : > { %1150 = vst [vmem:[%s1545_s4] sm:$0xff] %v1149_v50   ;;  %v867_v56 = vadd.f32 %v836_v52, %v835_v47  ;;  %1233 = vst [vmem:[%s1545_s4 + $0x40] sm:$0xff] %v1189_v54  }
 0x11d   : > { %v519_v57 = vpop.f32.mrb[4].mxu0  ;;  %v1631_v58 = vpop.f32.mrb[4].mxu1 }
 0x11e   : > { %v799_v59 = vadd.f32 %v798_v51, %v519_v57  ;;  %v837_v60 = vmul.f32 %v519_v57, %v519_v57  ;;  %v521_v61 = vpop.f32.mrb[5].mxu0  ;;  %v585_v62 = vpop.f32.mrb[5].mxu1 }
 0x11f   : > { %v522_v63 = vpop.f32.mrb[6].mxu0  ;;  %v1633_v0 = vpop.f32.mrb[6].mxu1 }
 0x120   : > { %v868_v1 = vadd.f32 %v867_v56, %v837_v60  ;;  %v1154_v2 = vpack.c.bf16 %v522_v63, %v519_v57  ;;  %v800_v3 = vadd.f32 %v799_v59, %v522_v63  ;;  %v838_v4 = vmul.f32 %v522_v63, %v522_v63  ;;  %v524_v5 = vpop.f32.mrb[7].mxu0  ;;  %v588_v6 = vpop.f32.mrb[7].mxu1 }
 0x121   : > { %v1194_v7 = vpack.c.bf16 %v1633_v0, %v1631_v58 }
 0x122   : > { %1226 = vst [vmem:[%s1545_s4 + $0x8] sm:$0xff] %v1154_v2   ;;  %v869_v8 = vadd.f32 %v868_v1, %v838_v4 }
 0x123   : > { %1234 = vst [vmem:[%s1545_s4 + $0x48] sm:$0xff] %v1194_v7  }
 0x125   : > { %v527_v9 = vpop.f32.mrb[8].mxu0  ;;  %v1639_v10 = vpop.f32.mrb[8].mxu1 }
 0x126   : > { %v801_v11 = vadd.f32 %v800_v3, %v527_v9  ;;  %v839_v12 = vmul.f32 %v527_v9, %v527_v9  ;;  %v529_v13 = vpop.f32.mrb[9].mxu0  ;;  %v593_v14 = vpop.f32.mrb[9].mxu1 }
 0x127   : > { %v530_v15 = vpop.f32.mrb[10].mxu0  ;;  %v1641_v16 = vpop.f32.mrb[10].mxu1 }
 0x128   : > { %v870_v17 = vadd.f32 %v869_v8, %v839_v12  ;;  %v1159_v18 = vpack.c.bf16 %v530_v15, %v527_v9  ;;  %v802_v19 = vadd.f32 %v801_v11, %v530_v15  ;;  %v840_v20 = vmul.f32 %v530_v15, %v530_v15  ;;  %v532_v21 = vpop.f32.mrb[11].mxu0  ;;  %v596_v22 = vpop.f32.mrb[11].mxu1 }
 0x129   : > { %v1199_v23 = vpack.c.bf16 %v1641_v16, %v1639_v10 }
 0x12a   : > { %1227 = vst [vmem:[%s1545_s4 + $0x10] sm:$0xff] %v1159_v18   ;;  %v871_v24 = vadd.f32 %v870_v17, %v840_v20 }
 0x12b   : > { %1235 = vst [vmem:[%s1545_s4 + $0x50] sm:$0xff] %v1199_v23  }
 0x12d   : > { %v535_v25 = vpop.f32.mrb[12].mxu0  ;;  %v1647_v26 = vpop.f32.mrb[12].mxu1 }
 0x12e   : > { %v803_v27 = vadd.f32 %v802_v19, %v535_v25  ;;  %v841_v28 = vmul.f32 %v535_v25, %v535_v25  ;;  %v537_v29 = vpop.f32.mrb[13].mxu0  ;;  %v601_v30 = vpop.f32.mrb[13].mxu1 }
 0x12f   : > { %v538_v31 = vpop.f32.mrb[14].mxu0  ;;  %v1649_v32 = vpop.f32.mrb[14].mxu1 }
 0x130   : > { %v872_v33 = vadd.f32 %v871_v24, %v841_v28  ;;  %v1164_v34 = vpack.c.bf16 %v538_v31, %v535_v25  ;;  %v804_v35 = vadd.f32 %v803_v27, %v538_v31  ;;  %v842_v36 = vmul.f32 %v538_v31, %v538_v31  ;;  %v540_v37 = vpop.f32.mrb[15].mxu0  ;;  %v604_v38 = vpop.f32.mrb[15].mxu1 }
 0x131   : > { %v1204_v39 = vpack.c.bf16 %v1649_v32, %v1647_v26 }
 0x132   : > { %1228 = vst [vmem:[%s1545_s4 + $0x18] sm:$0xff] %v1164_v34   ;;  %v873_v40 = vadd.f32 %v872_v33, %v842_v36 }
 0x133   : > { %1236 = vst [vmem:[%s1545_s4 + $0x58] sm:$0xff] %v1204_v39  }
 0x135   : > { %v543_v41 = vpop.f32.mrb[16].mxu0  ;;  %v1655_v42 = vpop.f32.mrb[16].mxu1 }
 0x136   : > { %v805_v43 = vadd.f32 %v804_v35, %v543_v41  ;;  %v843_v45 = vmul.f32 %v543_v41, %v543_v41  ;;  %v545_v46 = vpop.f32.mrb[17].mxu0  ;;  %v609_v47 = vpop.f32.mrb[17].mxu1 }
 0x137   : > { %v546_v48 = vpop.f32.mrb[18].mxu0  ;;  %v1657_v50 = vpop.f32.mrb[18].mxu1 }
 0x138   : > { %v874_v51 = vadd.f32 %v873_v40, %v843_v45  ;;  %v1169_v52 = vpack.c.bf16 %v546_v48, %v543_v41  ;;  %v806_v53 = vadd.f32 %v805_v43, %v546_v48  ;;  %v844_v54 = vmul.f32 %v546_v48, %v546_v48  ;;  %v548_v55 = vpop.f32.mrb[19].mxu0  ;;  %v612_v56 = vpop.f32.mrb[19].mxu1 }
 0x139   : > { %v1209_v57 = vpack.c.bf16 %v1657_v50, %v1655_v42  ;;  %v852_v55 = vmul.f32 %v1625_v49, %v1625_v49 }
 0x13a   : > { %1229 = vst [vmem:[%s1545_s4 + $0x20] sm:$0xff] %v1169_v52   ;;  %v875_v59 = vadd.f32 %v874_v51, %v844_v54  ;;  %v851_v52 = vmul.f32 %v1623_v44, %v1623_v44 }
 0x13b   : > { %1237 = vst [vmem:[%s1545_s4 + $0x60] sm:$0xff] %v1209_v57  }
 0x13d   : > { %v551_v60 = vpop.f32.mrb[20].mxu0  ;;  %v1663_v61 = vpop.f32.mrb[20].mxu1 }
 0x13e   : > { %v807_v62 = vadd.f32 %v806_v53, %v551_v60  ;;  %v845_v63 = vmul.f32 %v551_v60, %v551_v60  ;;  %v553_v1 = vpop.f32.mrb[21].mxu0  ;;  %v617_v2 = vpop.f32.mrb[21].mxu1 }
 0x13f   : > { %v554_v3 = vpop.f32.mrb[22].mxu0  ;;  %v1665_v4 = vpop.f32.mrb[22].mxu1 }
 0x140   : > { %v876_v5 = vadd.f32 %v875_v59, %v845_v63  ;;  %v1174_v6 = vpack.c.bf16 %v554_v3, %v551_v60  ;;  %v808_v7 = vadd.f32 %v807_v62, %v554_v3  ;;  %v846_v8 = vmul.f32 %v554_v3, %v554_v3  ;;  %v556_v9 = vpop.f32.mrb[23].mxu0  ;;  %v620_v11 = vpop.f32.mrb[23].mxu1 }
 0x141   : > { %v1214_v12 = vpack.c.bf16 %v1665_v4, %v1663_v61 }
 0x142   : > { %1230 = vst [vmem:[%s1545_s4 + $0x28] sm:$0xff] %v1174_v6   ;;  %v877_v13 = vadd.f32 %v876_v5, %v846_v8 }
 0x143   : > { %1238 = vst [vmem:[%s1545_s4 + $0x68] sm:$0xff] %v1214_v12  }
 0x145   : > { %v559_v14 = vpop.f32.mrb[24].mxu0  ;;  %v1671_v15 = vpop.f32.mrb[24].mxu1 }
 0x146   : > { %v809_v17 = vadd.f32 %v808_v7, %v559_v14  ;;  %v847_v18 = vmul.f32 %v559_v14, %v559_v14  ;;  %v561_v19 = vpop.f32.mrb[25].mxu0  ;;  %v625_v20 = vpop.f32.mrb[25].mxu1 }
 0x147   : > { %v562_v21 = vpop.f32.mrb[26].mxu0  ;;  %v1673_v22 = vpop.f32.mrb[26].mxu1 }
 0x148   : > { %v878_v23 = vadd.f32 %v877_v13, %v847_v18  ;;  %v1179_v24 = vpack.c.bf16 %v562_v21, %v559_v14  ;;  %v810_v25 = vadd.f32 %v809_v17, %v562_v21  ;;  %v848_v27 = vmul.f32 %v562_v21, %v562_v21  ;;  %v564_v28 = vpop.f32.mrb[27].mxu0  ;;  %v628_v29 = vpop.f32.mrb[27].mxu1 }
 0x149   : > { %v1219_v30 = vpack.c.bf16 %v1673_v22, %v1671_v15 }
 0x14a   : > { %1231 = vst [vmem:[%s1545_s4 + $0x30] sm:$0xff] %v1179_v24   ;;  %v879_v31 = vadd.f32 %v878_v23, %v848_v27 }
 0x14b   : > { %1239 = vst [vmem:[%s1545_s4 + $0x70] sm:$0xff] %v1219_v30  }
 0x14d   : > { %v567_v33 = vpop.f32.mrb[28].mxu0  ;;  %v1679_v34 = vpop.f32.mrb[28].mxu1 }
 0x14e   : > { %v811_v35 = vadd.f32 %v810_v25, %v567_v33  ;;  %v849_v36 = vmul.f32 %v567_v33, %v567_v33  ;;  %v569_v37 = vpop.f32.mrb[29].mxu0  ;;  %v633_v38 = vpop.f32.mrb[29].mxu1 }
 0x14f   : > { %v570_v39 = vpop.f32.mrb[30].mxu0  ;;  %v1683_v40 = vpop.f32.mrb[30].mxu1 }
 0x150   : > { %v880_v41 = vadd.f32 %v879_v31, %v849_v36  ;;  %v1184_v43 = vpack.c.bf16 %v570_v39, %v567_v33  ;;  %v812_v45 = vadd.f32 %v811_v35, %v570_v39  ;;  %v850_v46 = vmul.f32 %v570_v39, %v570_v39  ;;  %v572_v47 = vpop.f32.mrb[31].mxu0  ;;  %v636_v48 = vpop.f32.mrb[31].mxu1 }
 0x151   : > { %v1224_v51 = vpack.c.bf16 %v1683_v40, %v1679_v34 }
 0x152   : > { %1232 = vst [vmem:[%s1545_s4 + $0x38] sm:$0xff] %v1184_v43   ;;  %v813_v53 = vadd.f32 %v812_v45, %v1623_v44  ;;  %v881_v54 = vadd.f32 %v880_v41, %v850_v46 }
 0x153   : > { %1240 = vst [vmem:[%s1545_s4 + $0x78] sm:$0xff] %v1224_v51  }
 0x154   : > { %v814_v56 = vadd.f32 %v813_v53, %v1625_v49  ;;  %v882_v57 = vadd.f32 %v881_v54, %v851_v52 }
 0x155   : > { %1379 = shalt.err (!%p1376_p7)
}
 0x156   : > { %s1380_s24 = scalar_lea.hbm %s1688_s11, 2048  ;;  %s1384_s28 = scalar_lea.hbm %s1811_s2, 8192 }
 0x157   : > { %p1381_p8 = scmp.ne.s32.totalorder %s1688_s11, %s1380_s24  ;;  %p1385_p11 = scmp.lt.u32.totalorder %s1688_s11, %s1811_s2 }
 0x158   : > { %p1386_p12 = scmp.lt.u32.totalorder %s1384_s28, %s1380_s24  ;;  %p1388_p0 = scmp.lt.u32.totalorder %s1380_s24, %s1688_s11 }
 0x159   : > { %p1382_p9 = pnand %p1381_p8, %p1526_p5 }
 0x15a   : > { %p1387_p13 = por %p1386_p12, %p1385_p11 }
 0x15b   : > { %p1383_p10 = pneg %p1382_p9 }
 0x15c   : > { %p1389_p1 = por %p1388_p0, %p1387_p13 }
 0x15e   : > { %p1390_p3 = pnand %p1389_p1, %p1383_p10 }
 0x160   : > { %1393 = shalt.err (!%p1390_p3)
}
 0x161   : > { %s1463_s6 = smov 64   ;;  %s1464_s7 = smov 4   ;;  %v853_v44 = vmul.f32 %v1631_v58, %v1631_v58  ;;  %v815_v49 = vadd.f32 %v814_v56, %v1631_v58  ;;  %v883_v59 = vadd.f32 %v882_v57, %v852_v55  ;;  %v854_v60 = vmul.f32 %v1633_v0, %v1633_v0  ;;  %v904_v48 = vld [vmem:[#allocation4] sm:$0x3] }
 0x162   : > { %1259 = dma.vmem_to_hbm [thread:$0]  (%p1526_p5), %s1690_s8, 2048, %s1688_s11, %s1704_s17, %s1463_s6, %s1463_s6, %s1464_s7   ;;  %v855_v1 = vmul.f32 %v1639_v10, %v1639_v10  ;;  %v856_v5 = vmul.f32 %v1641_v16, %v1641_v16  ;;  %v857_v58 = vmul.f32 %v1647_v26, %v1647_v26  ;;  %v859_v13 = vmul.f32 %v1655_v42, %v1655_v42 }
 0x163   : > { %v816_v62 = vadd.f32 %v815_v49, %v1633_v0  ;;  %v884_v63 = vadd.f32 %v883_v59, %v853_v44  ;;  %v858_v0 = vmul.f32 %v1649_v32, %v1649_v32  ;;  %v860_v18 = vmul.f32 %v1657_v50, %v1657_v50  ;;  %s1465_s22 = smov [#allocation4]  }
 0x164   : > { %v861_v20 = vmul.f32 %v1663_v61, %v1663_v61  ;;  %v862_v23 = vmul.f32 %v1665_v4, %v1665_v4  ;;  %v863_v25 = vmul.f32 %v1671_v15, %v1671_v15  ;;  %v864_v28 = vmul.f32 %v1673_v22, %v1673_v22  ;;  %s937_s30 = sshll.u32 %s1465_s22, 4  ;;  %s938_s30 = int_to_ptr.vmem [resolvable:$true] %s937_s30 }
 0x165   : > { %v885_v2 = vadd.f32 %v884_v63, %v854_v60  ;;  %v817_v3 = vadd.f32 %v816_v62, %v1639_v10  ;;  %v866_v33 = vmul.f32 %v1683_v40, %v1683_v40  ;;  %vm905_vm1 = vcmask 1040384   ;;  %s1394_s8 = scalar_lea.vmem %s938_s30, 32  ;;  %p1401_p8 = scmp.lt.s32.totalorder %s938_s30, %s938_s30 }
 0x166   : > { %p1395_p5 = scmp.ne.s32.totalorder %s938_s30, %s1394_s8  ;;  %p1402_p9 = scmp.lt.s32.totalorder %s1394_s8, %s1394_s8 }
 0x167   : > { %v818_v6 = vadd.f32 %v817_v3, %v1641_v16  ;;  %v886_v7 = vadd.f32 %v885_v2, %v855_v1 }
 0x168   : > { %p1396_p4 = pnand %p1395_p5, %p83_p2  ;;  %p1403_p10 = por %p1402_p9, %p1401_p8 }
 0x169   : > { %v819_v8 = vadd.f32 %v818_v6, %v1647_v26  ;;  %v887_v9 = vadd.f32 %v886_v7, %v856_v5 }
 0x16a   : > { %p1397_p7 = pneg %p1396_p4 }
 0x16b   : > { %v820_v11 = vadd.f32 %v819_v8, %v1649_v32  ;;  %v888_v12 = vadd.f32 %v887_v9, %v857_v58 }
 0x16c   : > { %p1404_p11 = pnand %p1403_p10, %p1397_p7 }
 0x16d   : > { %v821_v10 = vadd.f32 %v820_v11, %v1655_v42  ;;  %v889_v14 = vadd.f32 %v888_v12, %v858_v0 }
 0x16f   : > { %v890_v16 = vadd.f32 %v889_v14, %v859_v13  ;;  %v822_v17 = vadd.f32 %v821_v10, %v1657_v50 }
 0x171   : > { %v891_v26 = vadd.f32 %v890_v16, %v860_v18  ;;  %v823_v19 = vadd.f32 %v822_v17, %v1663_v61  ;;  %v865_v61 = vmul.f32 %v1679_v34, %v1679_v34 }
 0x173   : > { %v892_v32 = vadd.f32 %v891_v26, %v861_v20  ;;  %v824_v21 = vadd.f32 %v823_v19, %v1665_v4 }
 0x175   : > { %v893_v42 = vadd.f32 %v892_v32, %v862_v23  ;;  %v825_v24 = vadd.f32 %v824_v21, %v1671_v15 }
 0x177   : > { %v894_v27 = vadd.f32 %v893_v42, %v863_v25  ;;  %v826_v50 = vadd.f32 %v825_v24, %v1673_v22 }
 0x179   : > { %v895_v29 = vadd.f32 %v894_v27, %v864_v28  ;;  %v827_v30 = vadd.f32 %v826_v50, %v1679_v34 }
 0x17b   : > { %v896_v31 = vadd.f32 %v895_v29, %v865_v61  ;;  %v828_v4 = vadd.f32 %v827_v30, %v1683_v40 }
 0x17d   : > { %v829_v35 = vrot.slane %v828_v4, 4  ;;  %v897_v15 = vadd.f32 %v896_v31, %v866_v33 }
 0x17f   : > { %v830_v36 = vadd.f32 %v829_v35, %v828_v4  ;;  %v898_v37 = vrot.slane %v897_v15, 4 }
 0x181   : > { %v831_v38 = vrot.slane %v830_v36, 2  ;;  %v899_v39 = vadd.f32 %v898_v37, %v897_v15 }
 0x183   : > { %v832_v41 = vadd.f32 %v831_v38, %v830_v36  ;;  %v900_v22 = vrot.slane %v899_v39, 2 }
 0x185   : > { %v833_v43 = vrot.slane %v832_v41, 1  ;;  %v901_v45 = vadd.f32 %v900_v22, %v899_v39 }
 0x187   : > { %v902_v46 = vrot.slane %v901_v45, 1  ;;  %v834_v34 = vadd.f32 %v833_v43, %v832_v41 }
 0x189   : > { %v903_v47 = vadd.f32 %v902_v46, %v901_v45 }
 0x18b   : > { %v906_v51 = vsel %vm905_vm1, %v834_v34, %v903_v47 }
 0x18c   : > { %v907_v40 = vadd.f32 %v906_v51, %v904_v48 }
 0x18e   : > { %908 = vst [vmem:[#allocation4] sm:$0x3] %v907_v40 }
 0x18f   : > { %1407 = shalt.err (!%p1404_p11)
}
 0x190   : > { %s1408_s11 = scalar_lea.hbm %s1812_s3, 32 }
 0x191   : > { %p1409_p12 = scmp.ne.s32.totalorder %s1812_s3, %s1408_s11  ;;  %p1414_p1 = scmp.lt.u32.totalorder %s1408_s11, %s1812_s3 }
 0x193   : > { %p1410_p13 = pnand %p1409_p12, %p83_p2 }
 0x195   : > { %p1411_p0 = pneg %p1410_p13 }
 0x197   : > { %p1416_p3 = pnand %p1414_p1, %p1411_p0 }
 0x199   : > { %1419 = shalt.err (!%p1416_p3)
}
 0x19a   : > { %1261 = dma.vmem_to_hbm [thread:$0]  (%p83_p2), %s938_s30, 32, %s1812_s3, [#allocation5]  }
 0x19b   : > { %1437 = dma.done.wait (%p83_p2), [#allocation5], 32  }
 0x19c   : > { %1439 = vsyncadd (%p83_p2), [#allocation5], 4294967264 }
 0x19d PF: > { %p1271_p5 = scmp.ge.s32.totalorder %s1458_s15, 2  ;;  %s953_s4 = sand.u32 1, %s1446_s12  }
 0x19e   : > { %s954_s27 = scalar_lea.sflag [#allocation3], %s953_s4 }
 0x19f   : > { %p1266_p4 = pnand %p1271_p5, %p1530_p6 }
 0x1a1   : > { %1441 = dma.done.wait (!%p1266_p4), %s954_s27, 2048  }
 0x1a2   : > { %1443 = vsyncadd (!%p1266_p4), %s954_s27, 4294965248  ;;  %p15_p7 = scmp.ge.s32.totalorder %s1511_s18, 6   ;;  %s1815_s12 = smov %s1450_s13 }
 0x1a3   : > { %s1816_s13 = smov %s1454_s14  ;;  %s1817_s14 = smov %s1522_s21 }
 0x1a4   : > { %s1818_s15 = smov %s1511_s18  ;;  %17 = sbr.rel (!%p15_p7) target bundleno = 4 (0x4), region = 75 }
 0x1ab   :  { %959 = vsyncpa [#allocation3], 1 }
 0x1ac   :  { %961 = vsyncpa [#allocation3 + $0x1], 1 }
 0x1ad   :  { %962 = vsyncpa [#allocation5], 1 }

</bundles_post_ra>
